<compile_context>
chip_gen: v5e
topology: v5e:2x2
jax: 0.10.0
libtpu: 0.0.40
codegen_flags: <defaults>
</compile_context>

<pallas_src>
import functools

import jax
import jax.numpy as jnp
from jax.experimental import pallas as pl
from jax.experimental.pallas import tpu as pltpu


def _round_up(a, b):
    return (a + b - 1) // b * b


def _cdiv(a, b):
    return -(-a // b)


def _num_lane_blocks(l):
    # Small problems: a single block (v5e/v6e have one TensorCore; extra grid
    # steps are pure ~0.35us per-step overhead).  Larger problems: an even
    # number of <=2048-lane blocks so both v7x TensorCores get work.
    if l <= 1024:
        return 1
    return 2 * _cdiv(l, 4096)


def _conv_kernel(x_hbm, w_ref, o_ref, xwin_ref, patch_ref, sem,
                 *, ksize, stride, wq):
    """One lane-block of the flattened output per grid step.

    x_hbm:     (stride*stride, Cin_pad, Lx)  channel-major flat input, HBM
    w_ref:     (Cout_pad, k*k*Cin_pad)       folded weight, VMEM
    o_ref:     (Cout_pad, lane_block)        lane-dense output block
    xwin_ref:  (stride*stride, Cin_pad, win) VMEM window scratch
    patch_ref: (k*k*Cin_pad, lane_block)     VMEM patch-stack scratch
    sem:       DMA semaphore
    """
    lane_block = o_ref.shape[1]
    cin_k = xwin_ref.shape[1]
    win = xwin_ref.shape[2]

    j = pl.program_id(0)
    base = pl.multiple_of(j * lane_block, 128)   # lane_block % 128 == 0

    # Manual DMA of just this block's window (+halo) from HBM into VMEM.
    cp = pltpu.make_async_copy(
        x_hbm.at[:, :, pl.ds(base, win)], xwin_ref, sem)
    cp.start()
    cp.wait()

    # Stack the k*k shifted (Cin_pad, lane_block) patches along the sublane
    # axis (aligned 8-row groups since cin_k % 8 == 0).  Every slice below is
    # static: unit-stride lane loads from the VMEM window, no win_cache vregs.
    t = 0
    for kh in range(ksize):
        for kw in range(ksize):
            phase = (kh % stride) * stride + (kw % stride)       # static int
            off = (kh // stride) * wq + (kw // stride)           # static int
            patch_ref[t * cin_k:(t + 1) * cin_k, :] = (
                xwin_ref[phase, :, off:off + lane_block])
            t += 1

    # Single fused MXU matmul: (Cout_pad, k*k*Cin_pad) @ (k*k*Cin_pad, Lb).
    o_ref[...] = jnp.dot(
        w_ref[...], patch_ref[...],
        preferred_element_type=jnp.float32).astype(o_ref.dtype)


def conv2d_pallas(x_nchw, weight_oihw, *, stride=1):
    """Equivalent of C(nIn, nOut, kSize, stride).forward(x) (Conv2d, bias=False).

    x_nchw:      (N, Cin, H, W)
    weight_oihw: (Cout, Cin, k, k)   PyTorch Conv2d weight layout
    returns:     (N, Cout, Hout, Wout)
    """
    n, cin, h, w = x_nchw.shape
    cout, cin_w, kh_, kw_ = weight_oihw.shape
    assert cin == cin_w and kh_ == kw_
    k = kh_
    pad = (k - 1) // 2
    hp, wp = h + 2 * pad, w + 2 * pad
    h_out = (hp - k) // stride + 1
    w_out = (wp - k) // stride + 1

    # Per-phase overcompute extents (unit-stride taps on stride-phase images).
    d = (k - 1) // stride
    hq, wq = h_out + d, w_out + d
    h_ext, w_ext = hq * stride, wq * stride
    # Overcompute extent must cover the last input row/col any valid output reads.
    assert h_ext >= (h_out - 1) * stride + k
    assert w_ext >= (w_out - 1) * stride + k

    cin_k = _round_up(cin, 8)     # aligned sublane groups for patch stacking
    cout_p = _round_up(cout, 8)   # output sublane alignment

    # ---- wrapper relayout (XLA): pad, phase-split, channel-major flatten ----
    # TODO(synk): fuse this pad + N<->C transpose into the kernel (masked edge
    # taps / element-offset index_map) to drop the extra HBM round trip of x.
    x_p = jnp.pad(x_nchw, ((0, 0), (0, cin_k - cin), (pad, pad), (pad, pad)))
    x_p = x_p[:, :, :min(hp, h_ext), :min(wp, w_ext)]        # drop unused edge
    x_p = jnp.pad(x_p, ((0, 0), (0, 0),
                        (0, h_ext - x_p.shape[2]),
                        (0, w_ext - x_p.shape[3])))
    ss = stride * stride
    L = n * hq * wq
    if stride == 1:
        # Phase split is a no-op: single relayout to channel-major flat.
        x_flat = jnp.transpose(x_p, (1, 0, 2, 3)).reshape(1, cin_k, L)
    else:
        # (N,C,hq,s,wq,s) -> (s,s,C,N,hq,wq) -> (s*s, C, N*hq*wq)
        x_ph = x_p.reshape(n, cin_k, hq, stride, wq, stride)
        x_ph = jnp.transpose(x_ph, (3, 5, 1, 0, 2, 4))
        x_flat = x_ph.reshape(ss, cin_k, L)

    # Lane tiling.
    nb = _num_lane_blocks(L)
    l_pad = _round_up(L, 128 * nb)
    lane_block = l_pad // nb
    halo = d * (wq + 1)                       # max tap offset
    win = _round_up(lane_block + halo, 128)   # per-block DMA window
    lx = (nb - 1) * lane_block + win
    x_flat = jnp.pad(x_flat, ((0, 0), (0, 0), (0, lx - L)))

    # Fused weight: (Cout_p, k*k*Cin_k), columns grouped per tap (kh, kw).
    w_t = jnp.transpose(weight_oihw, (2, 3, 0, 1))            # (k,k,Cout,Cin)
    w_t = jnp.pad(w_t, ((0, 0), (0, 0), (0, cout_p - cout), (0, cin_k - cin)))
    w_fused = jnp.transpose(w_t, (2, 0, 1, 3)).reshape(cout_p, k * k * cin_k)

    kernel = functools.partial(_conv_kernel, ksize=k, stride=stride, wq=wq)

    itemsize = jnp.dtype(x_nchw.dtype).itemsize
    vmem_need = (ss * cin_k * win                 # x window scratch
                 + k * k * cin_k * lane_block     # patch scratch
                 + 2 * cout_p * k * k * cin_k     # weight (double-buffered)
                 + 2 * cout_p * lane_block        # output (double-buffered)
                 ) * itemsize
    cp_kwargs = dict(dimension_semantics=("parallel",))
    if vmem_need > (12 << 20):
        cp_kwargs["vmem_limit_bytes"] = min(int(vmem_need * 2), 48 << 20)

    out_flat = pl.pallas_call(
        kernel,
        out_shape=jax.ShapeDtypeStruct((cout_p, l_pad), x_nchw.dtype),
        grid_spec=pltpu.PrefetchScalarGridSpec(
            num_scalar_prefetch=0,
            grid=(nb,),
            in_specs=[
                # x stays in HBM; the kernel DMAs only its window per block.
                pl.BlockSpec(memory_space=pl.ANY),
                # Tiny folded weight, constant index map -> fetched once.
                pl.BlockSpec((cout_p, k * k * cin_k), lambda j: (0, 0)),
            ],
            out_specs=pl.BlockSpec((cout_p, lane_block), lambda j: (0, j)),
            scratch_shapes=[
                pltpu.VMEM((ss, cin_k, win), x_nchw.dtype),          # x window
                pltpu.VMEM((k * k * cin_k, lane_block), x_nchw.dtype),  # patches
                pltpu.SemaphoreType.DMA(()),
            ]),
        compiler_params=pltpu.CompilerParams(**cp_kwargs),
    )(x_flat, w_fused)

    # ---- unflatten: (Cout, L) -> (N, Cout, Hout, Wout) ----------------------
    out = out_flat[:cout, :L].reshape(cout, n, hq, wq)[:, :, :h_out, :w_out]
    # TODO(synk): emit the output directly in NCHW order to skip this transpose.
    return jnp.transpose(out, (1, 0, 2, 3))


if __name__ == "__main__":
    # Module config: C(nIn=4, nOut=8, kSize=3)
    n_in, n_out, k_size = 4, 8, 3
    batch, height, width = 2, 16, 16

    key = jax.random.PRNGKey(0)
    kx, kw_ = jax.random.split(key)
    x = jax.random.normal(kx, (batch, n_in, height, width), dtype=jnp.float32)
    weight = (jax.random.normal(kw_, (n_out, n_in, k_size, k_size),
                                dtype=jnp.float32) * 0.1)

    for s in (1, 2):   # default stride and the down-sampling stride
        out = jax.block_until_ready(conv2d_pallas(x, weight, stride=s))
        p = (k_size - 1) // 2
        ref = jax.lax.conv_general_dilated(
            x, weight,
            window_strides=(s, s),
            padding=((p, p), (p, p)),
            dimension_numbers=("NCHW", "OIHW", "NCHW"))
        assert out.shape == ref.shape, (out.shape, ref.shape)
        assert jnp.allclose(out, ref, atol=1e-4, rtol=1e-4), (
            f"mismatch at stride={s}")

    print("KERNEL_OK")
</pallas_src>

<mosaic_0001>
module attributes {stable_mosaic.version = 11 : i64} {
  func.func @_conv_kernel(%arg0: i32, %arg1: memref<1x8x896xf32, #tpu.memory_space<any>>, %arg2: memref<8x72xf32, #tpu.memory_space<vmem>>, %arg3: memref<8x768xf32, #tpu.memory_space<vmem>>, %arg4: memref<1x8x896xf32, #tpu.memory_space<vmem>>, %arg5: memref<72x768xf32, #tpu.memory_space<vmem>>, %arg6: memref<!tpu.dma_semaphore, #tpu.memory_space<semaphore_mem>>) attributes {dimension_semantics = [#tpu.dimension_semantics<parallel>], iteration_bounds = array<i64: 1>, scalar_prefetch = 0 : i64, scratch_operands = 3 : i64, tpu.core_type = #tpu.core_type<tc>, window_params = [{}, {pipeline_mode = #tpu.pipeline_mode<synchronous>, transform_indices = @transform_1, window_bounds = array<i64: 8, 72>}, {transform_indices = @transform_2, window_bounds = array<i64: 8, 768>}]} {
    %c768_i32 = arith.constant 768 : i32
    %0 = arith.muli %arg0, %c768_i32 : i32
    %1 = tpu.assume_multiple %0, 128 : i32
    %c0_i32 = arith.constant 0 : i32
    %c0_i32_0 = arith.constant 0 : i32
    %2 = tpu.memref_slice %arg1[%c0_i32, %c0_i32_0, %1] : memref<1x8x896xf32, #tpu.memory_space<any>> -> memref<1x8x896xf32, #tpu.memory_space<any>>
    tpu.enqueue_dma source(%2 : memref<1x8x896xf32, #tpu.memory_space<any>>) target(%arg4 : memref<1x8x896xf32, #tpu.memory_space<vmem>>) target_semaphore(%arg6 : memref<!tpu.dma_semaphore, #tpu.memory_space<semaphore_mem>>)
    %c0_i32_1 = arith.constant 0 : i32
    %c0_i32_2 = arith.constant 0 : i32
    %3 = tpu.memref_slice %arg1[%c0_i32_1, %c0_i32_2, %1] : memref<1x8x896xf32, #tpu.memory_space<any>> -> memref<1x8x896xf32, #tpu.memory_space<any>>
    tpu.wait_dma2 semaphore(%arg6 : memref<!tpu.dma_semaphore, #tpu.memory_space<semaphore_mem>>) src(%3 : memref<1x8x896xf32, #tpu.memory_space<any>>) dst(%arg4 : memref<1x8x896xf32, #tpu.memory_space<vmem>>)
    %c0 = arith.constant 0 : index
    %c0_3 = arith.constant 0 : index
    %c0_4 = arith.constant 0 : index
    %4 = vector.load %arg4[%c0, %c0_3, %c0_4] : memref<1x8x896xf32, #tpu.memory_space<vmem>>, vector<1x8x768xf32>
    %5 = vector.shape_cast %4 : vector<1x8x768xf32> to vector<8x768xf32>
    %c0_5 = arith.constant 0 : index
    %c0_6 = arith.constant 0 : index
    %6 = vector.load %arg5[%c0_5, %c0_6] : memref<72x768xf32, #tpu.memory_space<vmem>>, vector<8x768xf32>
    tpu.vector_store %arg5[%c0_5, %c0_6], %5 {strides = array<i32>} : memref<72x768xf32, #tpu.memory_space<vmem>>, vector<8x768xf32>,
    %c0_7 = arith.constant 0 : index
    %c0_8 = arith.constant 0 : index
    %c1 = arith.constant 1 : index
    %7 = vector.load %arg4[%c0_7, %c0_8, %c1] : memref<1x8x896xf32, #tpu.memory_space<vmem>>, vector<1x8x768xf32>
    %8 = vector.shape_cast %7 : vector<1x8x768xf32> to vector<8x768xf32>
    %c8 = arith.constant 8 : index
    %c0_9 = arith.constant 0 : index
    %9 = vector.load %arg5[%c8, %c0_9] : memref<72x768xf32, #tpu.memory_space<vmem>>, vector<8x768xf32>
    tpu.vector_store %arg5[%c8, %c0_9], %8 {strides = array<i32>} : memref<72x768xf32, #tpu.memory_space<vmem>>, vector<8x768xf32>,
    %c0_10 = arith.constant 0 : index
    %c0_11 = arith.constant 0 : index
    %c2 = arith.constant 2 : index
    %10 = vector.load %arg4[%c0_10, %c0_11, %c2] : memref<1x8x896xf32, #tpu.memory_space<vmem>>, vector<1x8x768xf32>
    %11 = vector.shape_cast %10 : vector<1x8x768xf32> to vector<8x768xf32>
    %c16 = arith.constant 16 : index
    %c0_12 = arith.constant 0 : index
    %12 = vector.load %arg5[%c16, %c0_12] : memref<72x768xf32, #tpu.memory_space<vmem>>, vector<8x768xf32>
    tpu.vector_store %arg5[%c16, %c0_12], %11 {strides = array<i32>} : memref<72x768xf32, #tpu.memory_space<vmem>>, vector<8x768xf32>,
    %c0_13 = arith.constant 0 : index
    %c0_14 = arith.constant 0 : index
    %c18 = arith.constant 18 : index
    %13 = vector.load %arg4[%c0_13, %c0_14, %c18] : memref<1x8x896xf32, #tpu.memory_space<vmem>>, vector<1x8x768xf32>
    %14 = vector.shape_cast %13 : vector<1x8x768xf32> to vector<8x768xf32>
    %c24 = arith.constant 24 : index
    %c0_15 = arith.constant 0 : index
    %15 = vector.load %arg5[%c24, %c0_15] : memref<72x768xf32, #tpu.memory_space<vmem>>, vector<8x768xf32>
    tpu.vector_store %arg5[%c24, %c0_15], %14 {strides = array<i32>} : memref<72x768xf32, #tpu.memory_space<vmem>>, vector<8x768xf32>,
    %c0_16 = arith.constant 0 : index
    %c0_17 = arith.constant 0 : index
    %c19 = arith.constant 19 : index
    %16 = vector.load %arg4[%c0_16, %c0_17, %c19] : memref<1x8x896xf32, #tpu.memory_space<vmem>>, vector<1x8x768xf32>
    %17 = vector.shape_cast %16 : vector<1x8x768xf32> to vector<8x768xf32>
    %c32 = arith.constant 32 : index
    %c0_18 = arith.constant 0 : index
    %18 = vector.load %arg5[%c32, %c0_18] : memref<72x768xf32, #tpu.memory_space<vmem>>, vector<8x768xf32>
    tpu.vector_store %arg5[%c32, %c0_18], %17 {strides = array<i32>} : memref<72x768xf32, #tpu.memory_space<vmem>>, vector<8x768xf32>,
    %c0_19 = arith.constant 0 : index
    %c0_20 = arith.constant 0 : index
    %c20 = arith.constant 20 : index
    %19 = vector.load %arg4[%c0_19, %c0_20, %c20] : memref<1x8x896xf32, #tpu.memory_space<vmem>>, vector<1x8x768xf32>
    %20 = vector.shape_cast %19 : vector<1x8x768xf32> to vector<8x768xf32>
    %c40 = arith.constant 40 : index
    %c0_21 = arith.constant 0 : index
    %21 = vector.load %arg5[%c40, %c0_21] : memref<72x768xf32, #tpu.memory_space<vmem>>, vector<8x768xf32>
    tpu.vector_store %arg5[%c40, %c0_21], %20 {strides = array<i32>} : memref<72x768xf32, #tpu.memory_space<vmem>>, vector<8x768xf32>,
    %c0_22 = arith.constant 0 : index
    %c0_23 = arith.constant 0 : index
    %c36 = arith.constant 36 : index
    %22 = vector.load %arg4[%c0_22, %c0_23, %c36] : memref<1x8x896xf32, #tpu.memory_space<vmem>>, vector<1x8x768xf32>
    %23 = vector.shape_cast %22 : vector<1x8x768xf32> to vector<8x768xf32>
    %c48 = arith.constant 48 : index
    %c0_24 = arith.constant 0 : index
    %24 = vector.load %arg5[%c48, %c0_24] : memref<72x768xf32, #tpu.memory_space<vmem>>, vector<8x768xf32>
    tpu.vector_store %arg5[%c48, %c0_24], %23 {strides = array<i32>} : memref<72x768xf32, #tpu.memory_space<vmem>>, vector<8x768xf32>,
    %c0_25 = arith.constant 0 : index
    %c0_26 = arith.constant 0 : index
    %c37 = arith.constant 37 : index
    %25 = vector.load %arg4[%c0_25, %c0_26, %c37] : memref<1x8x896xf32, #tpu.memory_space<vmem>>, vector<1x8x768xf32>
    %26 = vector.shape_cast %25 : vector<1x8x768xf32> to vector<8x768xf32>
    %c56 = arith.constant 56 : index
    %c0_27 = arith.constant 0 : index
    %27 = vector.load %arg5[%c56, %c0_27] : memref<72x768xf32, #tpu.memory_space<vmem>>, vector<8x768xf32>
    tpu.vector_store %arg5[%c56, %c0_27], %26 {strides = array<i32>} : memref<72x768xf32, #tpu.memory_space<vmem>>, vector<8x768xf32>,
    %c0_28 = arith.constant 0 : index
    %c0_29 = arith.constant 0 : index
    %c38 = arith.constant 38 : index
    %28 = vector.load %arg4[%c0_28, %c0_29, %c38] : memref<1x8x896xf32, #tpu.memory_space<vmem>>, vector<1x8x768xf32>
    %29 = vector.shape_cast %28 : vector<1x8x768xf32> to vector<8x768xf32>
    %c64 = arith.constant 64 : index
    %c0_30 = arith.constant 0 : index
    %30 = vector.load %arg5[%c64, %c0_30] : memref<72x768xf32, #tpu.memory_space<vmem>>, vector<8x768xf32>
    tpu.vector_store %arg5[%c64, %c0_30], %29 {strides = array<i32>} : memref<72x768xf32, #tpu.memory_space<vmem>>, vector<8x768xf32>,
    %c0_31 = arith.constant 0 : index
    %c0_32 = arith.constant 0 : index
    %31 = vector.load %arg2[%c0_31, %c0_32] : memref<8x72xf32, #tpu.memory_space<vmem>>, vector<8x72xf32>
    %c0_33 = arith.constant 0 : index
    %c0_34 = arith.constant 0 : index
    %32 = vector.load %arg5[%c0_33, %c0_34] : memref<72x768xf32, #tpu.memory_space<vmem>>, vector<72x768xf32>
    %cst = arith.constant dense<0.000000e+00> : vector<8x768xf32>
    %33 = tpu.matmul %31, %32, %cst {dimension_numbers = #tpu.dot_dimension_numbers<[1], [0], [0], [1], [0, 0, 1, 1], [], []>} : vector<8x72xf32>, vector<72x768xf32>, vector<8x768xf32> -> vector<8x768xf32>
    %c0_35 = arith.constant 0 : index
    %c0_36 = arith.constant 0 : index
    %34 = vector.load %arg3[%c0_35, %c0_36] : memref<8x768xf32, #tpu.memory_space<vmem>>, vector<8x768xf32>
    tpu.vector_store %arg3[%c0_35, %c0_36], %33 {strides = array<i32>} : memref<8x768xf32, #tpu.memory_space<vmem>>, vector<8x768xf32>,
    return
  }
  func.func @transform_1(%arg0: i32) -> (i32, i32) {
    %c0_i32 = arith.constant 0 : i32
    %c0_i32_0 = arith.constant 0 : i32
    %c0_i32_1 = arith.constant 0 : i32
    return %c0_i32, %c0_i32_0 : i32, i32
  }
  func.func @transform_2(%arg0: i32) -> (i32, i32) {
    %c0_i32 = arith.constant 0 : i32
    %c0_i32_0 = arith.constant 0 : i32
    return %c0_i32, %arg0 : i32, i32
  }
}

</mosaic_0001>

<bundles_post_ra>
// kernel: tpu_custom_call.1
= control target key start
LH: loop header
LB: loop body
LE: loop exit
PB: predicated region body
PF: predicated region fallthrough
CT: control target
= control target key end

     0   :  { %7 = vsyncpa [#allocation6], 0  ;;  %s1047_s0 = inlined_call_operand.hbm [shape: f32[1,8,896], index: 0, kind: input, shape index: {}]   ;;  %s1048_s1 = inlined_call_operand.hbm [shape: f32[8,72], index: 1, kind: input, shape index: {}]   ;;  %s1049_s2 = inlined_call_operand.hbm [shape: f32[8,768], index: 2, kind: output, shape index: {}]  }
   0x1   :  { %8 = vsyncpa [#allocation7], 0  ;;  %s14_s11 = sshll.u32 %s1048_s1, 4  ;;  %s861_s12 = smov [#allocation5]   ;;  %s15_s11 = int_to_ptr.hbm [resolvable:$true] %s14_s11 }
   0x2   :  { %s16_s13 = sshll.u32 %s861_s12, 4  ;;  %s17_s13 = int_to_ptr.vmem [resolvable:$true] %s16_s13 }
   0x3   :  { %19 = dma.hbm_to_vmem [thread:$0]  %s15_s11, 128, %s17_s13, [#allocation6]  }
   0x4   :  { %855 = dma.done.wait [#allocation6], 128  }
   0x5   :  { %856 = vsyncadd [#allocation6], 4294967168  ;;  %s36_s16 = sshll.u32 %s1047_s0, 4  ;;  %s862_s17 = smov [#allocation2]   ;;  %s37_s16 = int_to_ptr.hbm [resolvable:$true] %s36_s16 }
   0x6   :  { %s38_s18 = sshll.u32 %s862_s17, 4  ;;  %s39_s18 = int_to_ptr.vmem [resolvable:$true] %s38_s18 }
   0x7   :  { %41 = dma.hbm_to_vmem [thread:$0]  %s37_s16, 896, %s39_s18, [#allocation4] }
   0x8   :  { %857 = dma.done.wait [#allocation4], 896 }
   0x9   :  { %858 = vsyncadd [#allocation4], 4294966400  ;;  %v893_v0 = vld [vmem:[#allocation2 + $0x20] sm:$0xff]  ;;  %v895_v1 = vld [vmem:[#allocation2 + $0x28] sm:$0xff]  ;;  %s863_s0 = smov 90   ;;  %s864_s1 = smov 91  }
   0xa   :  { %v897_v2 = vld [vmem:[#allocation2] sm:$0xff]  ;;  %v683_v3 = vpack.i.bf16 %v895_v1, %v893_v0  ;;  %v901_v4 = vld [vmem:[#allocation2 + $0x8] sm:$0xff]  ;;  %v905_v6 = vld [vmem:[#allocation2 + $0x10] sm:$0xff]  ;;  %s865_s19 = smov 92   ;;  %s866_s20 = smov 108   ;;  %vm416_vm0 = vcmask 736256  }
   0xb   :  { %v663_v5 = vpack.i.bf16 %v901_v4, %v897_v2  ;;  %v907_v7 = vld [vmem:[#allocation2 + $0x18] sm:$0xff]  ;;  %s867_s21 = smov 109   ;;  %v394_v9 = vld [vmem:[#allocation2 + $0x30] sm:$0xff]  ;;  %s868_s22 = smov 110   ;;  %vm369_vm1 = vcmask 744448   ;;  %vm322_vm2 = vcmask 752640  }
   0xc   :  { %684 = vrot.lane.b32.xlu2 %v683_v3, %s863_s0  ;;  %v668_v8 = vpack.i.bf16 %v907_v7, %v905_v6  ;;  %s869_s23 = smov 126   ;;  %s870_s24 = smov 127   ;;  %v778_v10 = vpack.i.bf16 %v394_v9, %v895_v1  ;;  %vm275_vm3 = vcmask 883712   ;;  %vm228_vm4 = vcmask 891904  }
   0xd   :  { %664 = vrot.lane.b32.xlu0 %v663_v5, %s863_s0  ;;  %674 = vrot.lane.b32.xlu1 %v663_v5, %s864_s1  ;;  %vm181_vm5 = vcmask 900096   ;;  %vm134_vm6 = vcmask 1031168   ;;  %vm87_vm7 = vcmask 1039360   ;;  %vm490_vm8 = vcmask 588800   ;;  %s871_s25 = smov [#allocation8]   ;;  %s627_s29 = sshll.u32 %s1049_s2, 4  ;;  %s628_s29 = int_to_ptr.hbm [resolvable:$true] %s627_s29 }
   0xe   :  { %s625_s26 = sshll.u32 %s871_s25, 4  ;;  %s626_s26 = int_to_ptr.vmem [resolvable:$true] %s625_s26 }
  0x14   :  { %689 = vrot.lane.b32.xlu2 %v663_v5, %s865_s19 }
  0x15   :  { %669 = vrot.lane.b32.xlu0 %v668_v8, %s863_s0  ;;  %679 = vrot.lane.b32.xlu1 %v668_v8, %s864_s1 }
  0x1c   :  { %704 = vrot.lane.b32.xlu2 %v663_v5, %s866_s20 }
  0x1d   :  { %699 = vrot.lane.b32.xlu1 %v683_v3, %s864_s1  ;;  %694 = vrot.lane.b32.xlu0 %v668_v8, %s865_s19 }
  0x24   :  { %719 = vrot.lane.b32.xlu2 %v663_v5, %s867_s21 }
  0x25   :  { %714 = vrot.lane.b32.xlu1 %v683_v3, %s865_s19  ;;  %709 = vrot.lane.b32.xlu0 %v668_v8, %s866_s20 }
  0x2c   :  { %414 = vrot.lane.b32.xlu2 %v394_v9, %s863_s0 }
  0x2d   :  { %729 = vrot.lane.b32.xlu1 %v683_v3, %s866_s20  ;;  %724 = vrot.lane.b32.xlu0 %v668_v8, %s867_s21 }
  0x34   :  { %744 = vrot.lane.b32.xlu2 %v683_v3, %s867_s21 }
  0x35   :  { %739 = vrot.lane.b32.xlu1 %v668_v8, %s868_s22  ;;  %734 = vrot.lane.b32.xlu0 %v663_v5, %s868_s22 }
  0x3c   :  { %754 = vrot.lane.b32.xlu2 %v668_v8, %s869_s23 }
  0x3d   :  { %367 = vrot.lane.b32.xlu0 %v394_v9, %s864_s1  ;;  %749 = vrot.lane.b32.xlu1 %v663_v5, %s869_s23 }
  0x44   :  { %764 = vrot.lane.b32.xlu2 %v663_v5, %s870_s24 }
  0x45   :  { %759 = vrot.lane.b32.xlu0 %v683_v3, %s868_s22  ;;  %320 = vrot.lane.b32.xlu1 %v394_v9, %s865_s19 }
  0x4c   :  { %273 = vrot.lane.b32.xlu2 %v394_v9, %s866_s20 }
  0x4d   :  { %774 = vrot.lane.b32.xlu1 %v683_v3, %s869_s23  ;;  %769 = vrot.lane.b32.xlu0 %v668_v8, %s870_s24 }
  0x54   :  { %179 = vrot.lane.b32.xlu2 %v394_v9, %s868_s22 }
  0x55   :  { %226 = vrot.lane.b32.xlu1 %v394_v9, %s867_s21  ;;  %81 = vrot.lane.b32.xlu0 %v893_v0, %s870_s24 }
  0x5d   :  { %779 = vrot.lane.b32.xlu1 %v778_v10, %s870_s24  ;;  %132 = vrot.lane.b32.xlu0 %v394_v9, %s869_s23 }
  0x66   :  { %v913_v11 = vpop.permute.xlu2 %684 }
  0x67   :  { %v687_v27 = vunpack.i.h.bf16 %v913_v11  ;;  %v686_v31 = vunpack.i.l.bf16 %v913_v11 }
  0x6e   :  { %v690_v12 = vpop.permute.xlu2 %689 }
  0x6f   :  { %v692_v15 = vunpack.i.h.bf16 %v690_v12  ;;  %v691_v16 = vunpack.i.l.bf16 %v690_v12 }
  0x71   :  { %v323_v28 = vsel %vm322_vm2, %v691_v16, %v692_v15 }
  0x76   :  { %v915_v13 = vpop.permute.xlu2 %704 }
  0x77   :  { %v707_v23 = vunpack.i.h.bf16 %v915_v13  ;;  %v706_v24 = vunpack.i.l.bf16 %v915_v13 }
  0x79   :  { %v276_v33 = vsel %vm275_vm3, %v706_v24, %v707_v23 }
  0x7e   :  { %v917_v14 = vpop.permute.xlu2 %719 }
  0x7f   :  { %v665_v17 = vpop.permute.xlu0 %664  ;;  %v675_v18 = vpop.permute.xlu1 %674  ;;  %v722_v29 = vunpack.i.h.bf16 %v917_v14  ;;  %v721_v30 = vunpack.i.l.bf16 %v917_v14 }
  0x80   :  { %v667_v19 = vunpack.i.h.bf16 %v665_v17  ;;  %v666_v20 = vunpack.i.l.bf16 %v665_v17  ;;  %v677_v21 = vunpack.i.h.bf16 %v675_v18  ;;  %v676_v22 = vunpack.i.l.bf16 %v675_v18 }
  0x81   :  { %v229_v41 = vsel %vm228_vm4, %v721_v30, %v722_v29 }
  0x82   :  { %v417_v25 = vsel %vm416_vm0, %v666_v20, %v667_v19  ;;  %v370_v26 = vsel %vm369_vm1, %v676_v22, %v677_v21 }
  0x83   :  { %501 = vmatpush.msra.mxu0 %v417_v25 }
  0x85   :  { %502 = vmatpush.msra.mxu0 %v370_v26 }
  0x86   :  { %v415_v32 = vpop.permute.xlu2 %414 }
  0x87   :  { %v670_v34 = vpop.permute.xlu0 %669  ;;  %v680_v35 = vpop.permute.xlu1 %679  ;;  %503 = vmatpush.msra.mxu0 %v323_v28  ;;  %v932_v36 = vsel %vm416_vm0, %v687_v27, %v415_v32 }
  0x88   :  { %v672_v37 = vunpack.i.h.bf16 %v670_v34  ;;  %v671_v38 = vunpack.i.l.bf16 %v670_v34  ;;  %v682_v39 = vunpack.i.h.bf16 %v680_v35  ;;  %v681_v40 = vunpack.i.l.bf16 %v680_v35 }
  0x89   :  { %504 = vmatpush.msra.mxu0 %v276_v33 }
  0x8a   :  { %v418_v42 = vsel %vm416_vm0, %v667_v19, %v671_v38  ;;  %v419_v43 = vsel %vm416_vm0, %v671_v38, %v672_v37  ;;  %v420_v44 = vsel %vm416_vm0, %v672_v37, %v686_v31  ;;  %v372_v45 = vsel %vm369_vm1, %v681_v40, %v682_v39 }
  0x8b   :  { %521 = vmatpush.msra.mxu1 %v418_v42  ;;  %541 = vmatpush.msra.mxu2 %v419_v43  ;;  %v371_v46 = vsel %vm369_vm1, %v677_v21, %v681_v40 }
  0x8c   :  { %561 = vmatpush.msra.mxu3 %v420_v44  ;;  %505 = vmatpush.msra.mxu0 %v229_v41  ;;  %v986_v44 = vld [vmem:[#allocation5] sm:$0xff] }
  0x8d   :  { %522 = vmatpush.msra.mxu1 %v371_v46  ;;  %542 = vmatpush.msra.mxu2 %v372_v45 }
  0x8e   :  { %v953_v60 = vpop.permute.xlu2 %744 }
  0x8f   :  { %v942_v47 = vpop.permute.xlu1 %699  ;;  %v695_v48 = vpop.permute.xlu0 %694  ;;  %v746_v12 = vunpack.i.l.bf16 %v953_v60 }
  0x90   :  { %v701_v49 = vunpack.i.l.bf16 %v942_v47  ;;  %v697_v50 = vunpack.i.h.bf16 %v695_v48  ;;  %v696_v51 = vunpack.i.l.bf16 %v695_v48  ;;  %v702_v43 = vunpack.i.h.bf16 %v942_v47 }
  0x92   :  { %v324_v52 = vsel %vm322_vm2, %v692_v15, %v696_v51  ;;  %v325_v53 = vsel %vm322_vm2, %v696_v51, %v697_v50  ;;  %v373_v54 = vsel %vm369_vm1, %v682_v39, %v701_v49 }
  0x93   :  { %523 = vmatpush.msra.mxu1 %v324_v52  ;;  %543 = vmatpush.msra.mxu2 %v325_v53  ;;  %v374_v53 = vsel %vm369_vm1, %v701_v49, %v702_v43 }
  0x94   :  { %562 = vmatpush.msra.mxu3 %v373_v54  ;;  %v747_v54 = vunpack.i.h.bf16 %v953_v60 }
  0x96   :  { %v969_v16 = vpop.permute.xlu2 %754 }
  0x97   :  { %v950_v55 = vpop.permute.xlu1 %714  ;;  %v710_v56 = vpop.permute.xlu0 %709  ;;  %v757_v18 = vunpack.i.h.bf16 %v969_v16  ;;  %v756_v25 = vunpack.i.l.bf16 %v969_v16 }
  0x98   :  { %v716_v57 = vunpack.i.l.bf16 %v950_v55  ;;  %v712_v58 = vunpack.i.h.bf16 %v710_v56  ;;  %v711_v59 = vunpack.i.l.bf16 %v710_v56  ;;  %v717_v45 = vunpack.i.h.bf16 %v950_v55 }
  0x99   :  { %v137_v30 = vsel %vm134_vm6, %v756_v25, %v757_v18  ;;  %v233_v56 = vsel %vm228_vm4, %v746_v12, %v747_v54 }
  0x9a   :  { %v277_v61 = vsel %vm275_vm3, %v707_v23, %v711_v59  ;;  %v278_v62 = vsel %vm275_vm3, %v711_v59, %v712_v58  ;;  %v326_v63 = vsel %vm322_vm2, %v697_v50, %v716_v57  ;;  %v421_v50 = vsel %vm416_vm0, %v686_v31, %v687_v27 }
  0x9b   :  { %524 = vmatpush.msra.mxu1 %v277_v61  ;;  %544 = vmatpush.msra.mxu2 %v278_v62  ;;  %v327_v11 = vsel %vm322_vm2, %v716_v57, %v717_v45 }
  0x9c   :  { %563 = vmatpush.msra.mxu3 %v326_v63 }
  0x9e   :  { %v765_v32 = vpop.permute.xlu2 %764 }
  0x9f   :  { %v960_v3 = vpop.permute.xlu1 %729  ;;  %v725_v5 = vpop.permute.xlu0 %724  ;;  %v767_v33 = vunpack.i.h.bf16 %v765_v32  ;;  %v766_v34 = vunpack.i.l.bf16 %v765_v32 }
  0xa0   :  { %v731_v8 = vunpack.i.l.bf16 %v960_v3  ;;  %v727_v9 = vunpack.i.h.bf16 %v725_v5  ;;  %v726_v10 = vunpack.i.l.bf16 %v725_v5  ;;  %v732_v52 = vunpack.i.h.bf16 %v960_v3 }
  0xa1   :  { %v88_v42 = vsel %vm87_vm7, %v766_v34, %v767_v33 }
  0xa2   :  { %v230_v13 = vsel %vm228_vm4, %v722_v29, %v726_v10  ;;  %v231_v14 = vsel %vm228_vm4, %v726_v10, %v727_v9  ;;  %v279_v15 = vsel %vm275_vm3, %v712_v58, %v731_v8  ;;  %v232_v17 = vsel %vm228_vm4, %v727_v9, %v746_v12 }
  0xa3   :  { %525 = vmatpush.msra.mxu1 %v230_v13  ;;  %545 = vmatpush.msra.mxu2 %v231_v14  ;;  %v280_v31 = vsel %vm275_vm3, %v731_v8, %v732_v52 }
  0xa4   :  { %564 = vmatpush.msra.mxu3 %v279_v15 }
  0xa6   :  { %565 = vmatpush.msra.mxu3 %v232_v17  ;;  %v274_v5 = vpop.permute.xlu2 %273 }
  0xa7   :  { %v740_v19 = vpop.permute.xlu1 %739  ;;  %v735_v20 = vpop.permute.xlu0 %734 }
  0xa8   :  { %v742_v21 = vunpack.i.h.bf16 %v740_v19  ;;  %v741_v22 = vunpack.i.l.bf16 %v740_v19  ;;  %v737_v23 = vunpack.i.h.bf16 %v735_v20  ;;  %v736_v24 = vunpack.i.l.bf16 %v735_v20 }
  0xaa   :  { %v182_v26 = vsel %vm181_vm5, %v736_v24, %v737_v23  ;;  %v183_v28 = vsel %vm181_vm5, %v737_v23, %v741_v22  ;;  %v184_v29 = vsel %vm181_vm5, %v741_v22, %v742_v21 }
  0xab   :  { %506 = vmatpush.msra.mxu0 %v182_v26  ;;  %526 = vmatpush.msra.mxu1 %v183_v28 }
  0xac   :  { %546 = vmatpush.msra.mxu2 %v184_v29 }
  0xae   :  { %547 = vmatpush.msra.mxu2 %v137_v30 }
  0xaf   :  { %v368_v35 = vpop.permute.xlu0 %367  ;;  %v750_v37 = vpop.permute.xlu1 %749 }
  0xb0   :  { %v752_v38 = vunpack.i.h.bf16 %v750_v37  ;;  %v751_v39 = vunpack.i.l.bf16 %v750_v37  ;;  %v375_v10 = vsel %vm369_vm1, %v702_v43, %v368_v35 }
  0xb2   :  { %v135_v40 = vsel %vm134_vm6, %v751_v39, %v752_v38  ;;  %v136_v41 = vsel %vm134_vm6, %v752_v38, %v756_v25 }
  0xb3   :  { %507 = vmatpush.msra.mxu0 %v135_v40  ;;  %527 = vmatpush.msra.mxu1 %v136_v41 }
  0xb5   :  { %508 = vmatpush.msra.mxu0 %v88_v42 }
  0xb7   :  { %v760_v46 = vpop.permute.xlu0 %759  ;;  %v321_v48 = vpop.permute.xlu1 %320  ;;  %509 = vmatpush.msra.mxu0 %v897_v2 }
  0xb8   :  { %v761_v51 = vunpack.i.l.bf16 %v760_v46  ;;  %645 = vmatmul.msk.f32.vlgmr.msra.gmra.mxu0 %vm490_vm8, %v986_v44  ;;  %v762_v27 = vunpack.i.h.bf16 %v760_v46 }
  0xb9   :  { %581 = vmatpush.msrb.mxu0 %v421_v50 }
  0xba   :  { %v185_v2 = vsel %vm181_vm5, %v742_v21, %v761_v51  ;;  %v186_v55 = vsel %vm181_vm5, %v761_v51, %v762_v27 }
  0xbb   :  { %582 = vmatpush.msrb.mxu0 %v374_v53  ;;  %566 = vmatpush.msra.mxu3 %v185_v2 }
  0xbd   :  { %583 = vmatpush.msrb.mxu0 %v327_v11 }
  0xbf   :  { %584 = vmatpush.msrb.mxu0 %v280_v31  ;;  %v775_v47 = vpop.permute.xlu1 %774  ;;  %v770_v49 = vpop.permute.xlu0 %769 }
  0xc0   :  { %v777_v58 = vunpack.i.h.bf16 %v775_v47  ;;  %v776_v59 = vunpack.i.l.bf16 %v775_v47  ;;  %v772_v61 = vunpack.i.h.bf16 %v770_v49  ;;  %v771_v62 = vunpack.i.l.bf16 %v770_v49 }
  0xc1   :  { %585 = vmatpush.msrb.mxu0 %v233_v56 }
  0xc2   :  { %v89_v57 = vsel %vm87_vm7, %v767_v33, %v771_v62  ;;  %v90_v63 = vsel %vm87_vm7, %v771_v62, %v772_v61  ;;  %v138_v3 = vsel %vm134_vm6, %v757_v18, %v776_v59  ;;  %v139_v60 = vsel %vm134_vm6, %v776_v59, %v777_v58 }
  0xc3   :  { %586 = vmatpush.msrb.mxu0 %v186_v55  ;;  %528 = vmatpush.msra.mxu1 %v89_v57 }
  0xc4   :  { %548 = vmatpush.msra.mxu2 %v90_v63  ;;  %567 = vmatpush.msra.mxu3 %v138_v3 }
  0xc5   :  { %587 = vmatpush.msrb.mxu0 %v139_v60  ;;  %529 = vmatpush.msra.mxu1 %v901_v4  ;;  %v328_v4 = vsel %vm322_vm2, %v717_v45, %v321_v48 }
  0xc6   :  { %549 = vmatpush.msra.mxu2 %v905_v6  ;;  %646 = vmatmul.msk.f32.vlgmr.msra.gmra.mxu1 %vm490_vm8, %v986_v44  ;;  %v281_v6 = vsel %vm275_vm3, %v732_v52, %v274_v5 }
  0xc7   :  { %601 = vmatpush.msrb.mxu1 %v932_v36  ;;  %647 = vmatmul.msk.f32.vlgmr.msra.gmra.mxu2 %vm490_vm8, %v986_v44  ;;  %v227_v8 = vpop.permute.xlu1 %226  ;;  %v82_v9 = vpop.permute.xlu0 %81 }
  0xc8   :  { %v91_v12 = vsel %vm87_vm7, %v772_v61, %v82_v9  ;;  %v180_v36 = vpop.permute.xlu2 %179  ;;  %v234_v13 = vsel %vm228_vm4, %v747_v54, %v227_v8 }
  0xc9   :  { %602 = vmatpush.msrb.mxu1 %v375_v10  ;;  %568 = vmatpush.msra.mxu3 %v91_v12  ;;  %v187_v16 = vsel %vm181_vm5, %v762_v27, %v180_v36 }
  0xcb   :  { %603 = vmatpush.msrb.mxu1 %v328_v4  ;;  %569 = vmatpush.msra.mxu3 %v907_v7 }
  0xcc   :  { %648 = vmatmul.msk.f32.vlgmr.msra.gmra.mxu3 %vm490_vm8, %v986_v44 }
  0xcd   :  { %604 = vmatpush.msrb.mxu1 %v281_v6 }
  0xcf   :  { %605 = vmatpush.msrb.mxu1 %v234_v13  ;;  %v780_v14 = vpop.permute.xlu1 %779  ;;  %v133_v15 = vpop.permute.xlu0 %132 }
  0xd0   :  { %v782_v17 = vunpack.i.h.bf16 %v780_v14  ;;  %v781_v18 = vunpack.i.l.bf16 %v780_v14  ;;  %v140_v19 = vsel %vm134_vm6, %v777_v58, %v133_v15 }
  0xd1   :  { %606 = vmatpush.msrb.mxu1 %v187_v16 }
  0xd2   :  { %v92_v7 = vsel %vm87_vm7, %v82_v9, %v781_v18  ;;  %v93_v20 = vsel %vm87_vm7, %v781_v18, %v782_v17 }
  0xd3   :  { %607 = vmatpush.msrb.mxu1 %v140_v19  ;;  %588 = vmatpush.msrb.mxu0 %v92_v7 }
  0xd5   :  { %608 = vmatpush.msrb.mxu1 %v93_v20  ;;  %589 = vmatpush.msrb.mxu0 %v893_v0 }
  0xd6   :  { %649 = vmatmul.msk.f32.vlgmr.msrb.gmra.mxu0 %vm490_vm8, %v986_v44 }
  0xd7   :  { %609 = vmatpush.msrb.mxu1 %v895_v1 }
  0xd8   :  { %650 = vmatmul.msk.f32.vlgmr.msrb.gmra.mxu1 %vm490_vm8, %v986_v44 }
 0x135   :  { %v511_v21 = vpop.f32.mrf.mxu0 }
 0x136   :  { %614 = vst [vmem:[#allocation8] sm:$0xff] %v511_v21 }
 0x143   :  { %v531_v22 = vpop.f32.mrf.mxu1 }
 0x144   :  { %615 = vst [vmem:[#allocation8 + $0x8] sm:$0xff] %v531_v22 }
 0x14a   :  { %v551_v23 = vpop.f32.mrf.mxu2 }
 0x14b   :  { %616 = vst [vmem:[#allocation8 + $0x10] sm:$0xff] %v551_v23 }
 0x14f   :  { %v571_v24 = vpop.f32.mrf.mxu3 }
 0x150   :  { %617 = vst [vmem:[#allocation8 + $0x18] sm:$0xff] %v571_v24 }
 0x153   :  { %v591_v0 = vpop.f32.mrf.mxu0 }
 0x154   :  { %618 = vst [vmem:[#allocation8 + $0x20] sm:$0xff] %v591_v0 }
 0x155   :  { %v611_v1 = vpop.f32.mrf.mxu1 }
 0x156   :  { %619 = vst [vmem:[#allocation8 + $0x28] sm:$0xff] %v611_v1 }
 0x157   :  { %630 = dma.vmem_to_hbm [thread:$0]  %s626_s26, 768, %s628_s29, [#allocation7]  }
 0x158   :  { %859 = dma.done.wait [#allocation7], 768  }
 0x159   :  { %860 = vsyncadd [#allocation7], 4294966528 }
 0x15a   :  { %635 = vsyncpa [#allocation6], 1 }
 0x15b   :  { %636 = vsyncpa [#allocation7], 1 }
 0x15c   :  { %637 = vsyncmov [#allocation4] }
 0x15f   :  { %s638_s30 = vpop.sfrf %637 }
 0x160   :  { %p651_p0 = scmp.ne.s32.totalorder %s638_s30, 0 }
 0x162   :  { %642 = shalt.err (%p651_p0)  }

</bundles_post_ra>
